<compile_context>
chip_gen: v5e
topology: v5e:2x2
jax: 0.10.0
libtpu: 0.0.40
codegen_flags: <defaults>
</compile_context>

<pallas_src>
import jax
import jax.numpy as jnp
from jax.experimental import pallas as pl
from jax.experimental.pallas import tpu as pltpu

LANE = 128  # TPU lane width: hidden/output feature dims are padded to this.


def dynamics_mlp_kernel(s_ref, a_ref, w1s_ref, w1a_ref, w23_ref, b_ref,
                        out_ref):
    """Fused 3-layer MLP on one batch tile (f32, MXU f32 accumulation).

    h1 = relu(state @ W1_s + action @ W1_a + b1)   # concat fused via split W1
    h2 = relu(h1 @ W2 + b2)                        # W2 = w23[0]
    y  = h2 @ W3 + b3                              # W3 = w23[1], lane-padded
    """
    b = b_ref[...]  # (3, LANE) fused bias slab: rows = [b1, b2, b3]

    # Layer 1: split-input Linear + ReLU (two partial dots accumulate on MXU).
    h1 = jnp.dot(s_ref[...], w1s_ref[...], preferred_element_type=jnp.float32)
    h1 = h1 + jnp.dot(a_ref[...], w1a_ref[...],
                      preferred_element_type=jnp.float32)
    h1 = jnp.maximum(h1 + b[0:1, :], 0.0)

    # Layer 2: Linear + ReLU.
    h2 = jnp.dot(h1, w23_ref[0], preferred_element_type=jnp.float32)
    h2 = jnp.maximum(h2 + b[1:2, :], 0.0)

    # Layer 3: Linear (state_diff, zero-padded out to LANE columns -> the
    # store is a full-width, unmasked lane-dense store).
    y = jnp.dot(h2, w23_ref[1], preferred_element_type=jnp.float32)
    out_ref[...] = (y + b[2:3, :]).astype(out_ref.dtype)


def dynamics_model_forward(state, action, params, *, tile_b=512):
    """state_diff = MLP(concat(state, action)); the concat is fused in-kernel.

    Weights stay VMEM-resident across all batch tiles; only state/action
    stream through the pipeline.
    """
    state = state.astype(jnp.float32)
    action = action.astype(jnp.float32)
    w1s, w1a, w23, b = params["w1s"], params["w1a"], params["w23"], params["b"]
    state_dim = w1s.shape[0]
    action_dim = w1a.shape[0]
    out_pad = w23.shape[-1]  # lane-padded output width (128)

    batch = state.shape[0]
    tb = batch if batch <= tile_b else tile_b
    grid = (pl.cdiv(batch, tb),)

    # Weights / biases: full-array blocks with constant index_maps -> loaded
    # once and kept resident in VMEM across every batch tile.
    resident = lambda arr: pl.BlockSpec(arr.shape,
                                        lambda i, nd=arr.ndim: (0,) * nd)

    out_padded = pl.pallas_call(
        dynamics_mlp_kernel,
        out_shape=jax.ShapeDtypeStruct((batch, out_pad), jnp.float32),
        grid=grid,
        in_specs=[
            pl.BlockSpec((tb, state_dim), lambda i: (i, 0)),   # streams
            pl.BlockSpec((tb, action_dim), lambda i: (i, 0)),  # streams
            resident(w1s), resident(w1a), resident(w23), resident(b),
        ],
        out_specs=pl.BlockSpec((tb, out_pad), lambda i: (i, 0)),
        compiler_params=pltpu.CompilerParams(
            dimension_semantics=("parallel",)),  # batch tiles across TCs
    )(state, action, w1s, w1a, w23, b)

    # Slice the logical state_diff width back out of the lane-padded output.
    return out_padded[:, :state_dim]


def init_params(key, state_dim, action_dim, hidden_sizes=(64, 64)):
    """PyTorch-Linear-style uniform fan-in init, pre-padded for the kernel.

    W1 is split by input rows (state / action); hidden and output widths are
    zero-padded to LANE so padded rows/columns contribute exactly 0 and never
    perturb real outputs.
    """
    h1, h2 = hidden_sizes
    assert max(h1, h2, state_dim) <= LANE
    in_dim = state_dim + action_dim
    k1w, k1b, k2w, k2b, k3w, k3b = jax.random.split(key, 6)

    def u(k, shape, fan_in):
        bound = float(fan_in) ** -0.5
        return jax.random.uniform(k, shape, jnp.float32,
                                  minval=-bound, maxval=bound)

    # Layer 1 (split into state / action halves, columns padded h1 -> LANE).
    w1 = u(k1w, (in_dim, h1), in_dim)
    w1s = jnp.zeros((state_dim, LANE), jnp.float32).at[:, :h1].set(
        w1[:state_dim])
    w1a = jnp.zeros((action_dim, LANE), jnp.float32).at[:, :h1].set(
        w1[state_dim:])
    b1 = u(k1b, (h1,), in_dim)

    # Layers 2 & 3 stacked into one (2, LANE, LANE) resident slab.
    w2 = jnp.zeros((LANE, LANE), jnp.float32).at[:h1, :h2].set(
        u(k2w, (h1, h2), h1))
    b2 = u(k2b, (h2,), h1)
    w3 = jnp.zeros((LANE, LANE), jnp.float32).at[:h2, :state_dim].set(
        u(k3w, (h2, state_dim), h2))
    b3 = u(k3b, (state_dim,), h2)
    w23 = jnp.stack([w2, w3], axis=0)

    # Fused bias slab: one (3, LANE) VMEM operand instead of three small DMAs.
    b = (jnp.zeros((3, LANE), jnp.float32)
         .at[0, :h1].set(b1)
         .at[1, :h2].set(b2)
         .at[2, :state_dim].set(b3))

    return {"w1s": w1s, "w1a": w1a, "w23": w23, "b": b}


def reference_forward(state, action, params):
    """Pure-JAX reference (same padded params; padded lanes are zero, so this
    is exactly the PyTorch ReLU-MLP applied to concat(state, action))."""
    state = state.astype(jnp.float32)
    action = action.astype(jnp.float32)
    b = params["b"]
    h1 = jnp.maximum(state @ params["w1s"] + action @ params["w1a"]
                     + b[0:1, :], 0.0)
    h2 = jnp.maximum(h1 @ params["w23"][0] + b[1:2, :], 0.0)
    y = h2 @ params["w23"][1] + b[2:3, :]
    return y[:, :params["w1s"].shape[0]]


# TODO(synk): if this model is called once per rollout/MPC step, hoist the
# time loop inside a single pallas_call (extra grid axis over steps, weights
# resident) to amortize per-call launch + weight-DMA overhead.


if __name__ == "__main__":
    # Small shapes consistent with the module's forward:
    #   state: (batch, state_dim), action: (batch, action_dim)
    batch, state_dim, action_dim = 8, 12, 4
    hidden_sizes = (64, 64)

    key = jax.random.PRNGKey(0)
    key, ks, ka, kp = jax.random.split(key, 4)
    state = jax.random.normal(ks, (batch, state_dim), jnp.float32)
    action = jax.random.normal(ka, (batch, action_dim), jnp.float32)
    params = init_params(kp, state_dim, action_dim, hidden_sizes)

    out = jax.block_until_ready(dynamics_model_forward(state, action, params))
    ref = reference_forward(state, action, params)
    assert out.shape == (batch, state_dim)
    assert jnp.allclose(out, ref, atol=1e-5, rtol=1e-5), "mismatch vs reference"

    # Multi-tile batch to exercise the grid (weights stay VMEM-resident across
    # the batch tiles; batch axis marked "parallel").
    batch2 = 32
    k2s, k2a = jax.random.split(jax.random.PRNGKey(1))
    state2 = jax.random.normal(k2s, (batch2, state_dim), jnp.float32)
    action2 = jax.random.normal(k2a, (batch2, action_dim), jnp.float32)
    out2 = jax.block_until_ready(
        dynamics_model_forward(state2, action2, params, tile_b=16))
    ref2 = reference_forward(state2, action2, params)
    assert out2.shape == (batch2, state_dim)
    assert jnp.allclose(out2, ref2, atol=1e-5, rtol=1e-5), "tiled mismatch"

    print("KERNEL_OK")
</pallas_src>

<mosaic_0001>
module attributes {stable_mosaic.version = 11 : i64} {
  func.func @dynamics_mlp_kernel(%arg0: i32, %arg1: memref<8x12xf32, #tpu.memory_space<vmem>>, %arg2: memref<8x4xf32, #tpu.memory_space<vmem>>, %arg3: memref<12x128xf32, #tpu.memory_space<vmem>>, %arg4: memref<4x128xf32, #tpu.memory_space<vmem>>, %arg5: memref<2x128x128xf32, #tpu.memory_space<vmem>>, %arg6: memref<3x128xf32, #tpu.memory_space<vmem>>, %arg7: memref<8x128xf32, #tpu.memory_space<vmem>>) attributes {dimension_semantics = [#tpu.dimension_semantics<parallel>], iteration_bounds = array<i64: 1>, scalar_prefetch = 0 : i64, scratch_operands = 0 : i64, tpu.core_type = #tpu.core_type<tc>, window_params = [{transform_indices = @transform_0, window_bounds = array<i64: 8, 12>}, {transform_indices = @transform_1, window_bounds = array<i64: 8, 4>}, {pipeline_mode = #tpu.pipeline_mode<synchronous>, transform_indices = @transform_2, window_bounds = array<i64: 12, 128>}, {pipeline_mode = #tpu.pipeline_mode<synchronous>, transform_indices = @transform_3, window_bounds = array<i64: 4, 128>}, {pipeline_mode = #tpu.pipeline_mode<synchronous>, transform_indices = @transform_4, window_bounds = array<i64: 2, 128, 128>}, {pipeline_mode = #tpu.pipeline_mode<synchronous>, transform_indices = @transform_5, window_bounds = array<i64: 3, 128>}, {transform_indices = @transform_6, window_bounds = array<i64: 8, 128>}]} {
    %c0 = arith.constant 0 : index
    %c0_0 = arith.constant 0 : index
    %0 = vector.load %arg6[%c0, %c0_0] : memref<3x128xf32, #tpu.memory_space<vmem>>, vector<3x128xf32>
    %c0_1 = arith.constant 0 : index
    %c0_2 = arith.constant 0 : index
    %1 = vector.load %arg1[%c0_1, %c0_2] : memref<8x12xf32, #tpu.memory_space<vmem>>, vector<8x12xf32>
    %c0_3 = arith.constant 0 : index
    %c0_4 = arith.constant 0 : index
    %2 = vector.load %arg3[%c0_3, %c0_4] : memref<12x128xf32, #tpu.memory_space<vmem>>, vector<12x128xf32>
    %cst = arith.constant dense<0.000000e+00> : vector<8x128xf32>
    %3 = tpu.matmul %1, %2, %cst {dimension_numbers = #tpu.dot_dimension_numbers<[1], [0], [0], [1], [0, 0, 1, 1], [], []>} : vector<8x12xf32>, vector<12x128xf32>, vector<8x128xf32> -> vector<8x128xf32>
    %c0_5 = arith.constant 0 : index
    %c0_6 = arith.constant 0 : index
    %4 = vector.load %arg2[%c0_5, %c0_6] : memref<8x4xf32, #tpu.memory_space<vmem>>, vector<8x4xf32>
    %c0_7 = arith.constant 0 : index
    %c0_8 = arith.constant 0 : index
    %5 = vector.load %arg4[%c0_7, %c0_8] : memref<4x128xf32, #tpu.memory_space<vmem>>, vector<4x128xf32>
    %cst_9 = arith.constant dense<0.000000e+00> : vector<8x128xf32>
    %6 = tpu.matmul %4, %5, %cst_9 {dimension_numbers = #tpu.dot_dimension_numbers<[1], [0], [0], [1], [0, 0, 1, 1], [], []>} : vector<8x4xf32>, vector<4x128xf32>, vector<8x128xf32> -> vector<8x128xf32>
    %7 = arith.addf %3, %6 : vector<8x128xf32>
    %8 = vector.extract_strided_slice %0 {offsets = [0, 0], sizes = [1, 128], strides = [1, 1]} : vector<3x128xf32> to vector<1x128xf32>
    %9 = vector.broadcast %8 : vector<1x128xf32> to vector<8x128xf32>
    %10 = arith.addf %7, %9 : vector<8x128xf32>
    %cst_10 = arith.constant 0.000000e+00 : f32
    %11 = vector.broadcast %cst_10 : f32 to vector<8x128xf32>
    %12 = arith.maximumf %10, %11 : vector<8x128xf32>
    %c0_11 = arith.constant 0 : index
    %c0_12 = arith.constant 0 : index
    %c0_13 = arith.constant 0 : index
    %13 = vector.load %arg5[%c0_11, %c0_12, %c0_13] : memref<2x128x128xf32, #tpu.memory_space<vmem>>, vector<1x128x128xf32>
    %14 = vector.shape_cast %13 : vector<1x128x128xf32> to vector<128x128xf32>
    %cst_14 = arith.constant dense<0.000000e+00> : vector<8x128xf32>
    %15 = tpu.matmul %12, %14, %cst_14 {dimension_numbers = #tpu.dot_dimension_numbers<[1], [0], [0], [1], [0, 0, 1, 1], [], []>} : vector<8x128xf32>, vector<128x128xf32>, vector<8x128xf32> -> vector<8x128xf32>
    %16 = vector.extract_strided_slice %0 {offsets = [1, 0], sizes = [1, 128], strides = [1, 1]} : vector<3x128xf32> to vector<1x128xf32>
    %17 = vector.broadcast %16 : vector<1x128xf32> to vector<8x128xf32>
    %18 = arith.addf %15, %17 : vector<8x128xf32>
    %cst_15 = arith.constant 0.000000e+00 : f32
    %19 = vector.broadcast %cst_15 : f32 to vector<8x128xf32>
    %20 = arith.maximumf %18, %19 : vector<8x128xf32>
    %c1 = arith.constant 1 : index
    %c0_16 = arith.constant 0 : index
    %c0_17 = arith.constant 0 : index
    %21 = vector.load %arg5[%c1, %c0_16, %c0_17] : memref<2x128x128xf32, #tpu.memory_space<vmem>>, vector<1x128x128xf32>
    %22 = vector.shape_cast %21 : vector<1x128x128xf32> to vector<128x128xf32>
    %cst_18 = arith.constant dense<0.000000e+00> : vector<8x128xf32>
    %23 = tpu.matmul %20, %22, %cst_18 {dimension_numbers = #tpu.dot_dimension_numbers<[1], [0], [0], [1], [0, 0, 1, 1], [], []>} : vector<8x128xf32>, vector<128x128xf32>, vector<8x128xf32> -> vector<8x128xf32>
    %24 = vector.extract_strided_slice %0 {offsets = [2, 0], sizes = [1, 128], strides = [1, 1]} : vector<3x128xf32> to vector<1x128xf32>
    %25 = vector.broadcast %24 : vector<1x128xf32> to vector<8x128xf32>
    %26 = arith.addf %23, %25 : vector<8x128xf32>
    %c0_19 = arith.constant 0 : index
    %c0_20 = arith.constant 0 : index
    %27 = vector.load %arg7[%c0_19, %c0_20] : memref<8x128xf32, #tpu.memory_space<vmem>>, vector<8x128xf32>
    tpu.vector_store %arg7[%c0_19, %c0_20], %26 {strides = array<i32>} : memref<8x128xf32, #tpu.memory_space<vmem>>, vector<8x128xf32>,
    return
  }
  func.func @transform_0(%arg0: i32) -> (i32, i32) {
    %c0_i32 = arith.constant 0 : i32
    %c0_i32_0 = arith.constant 0 : i32
    return %arg0, %c0_i32 : i32, i32
  }
  func.func @transform_1(%arg0: i32) -> (i32, i32) {
    %c0_i32 = arith.constant 0 : i32
    %c0_i32_0 = arith.constant 0 : i32
    return %arg0, %c0_i32 : i32, i32
  }
  func.func @transform_2(%arg0: i32) -> (i32, i32) {
    %c0_i32 = arith.constant 0 : i32
    %c0_i32_0 = arith.constant 0 : i32
    %c0_i32_1 = arith.constant 0 : i32
    return %c0_i32, %c0_i32_0 : i32, i32
  }
  func.func @transform_3(%arg0: i32) -> (i32, i32) {
    %c0_i32 = arith.constant 0 : i32
    %c0_i32_0 = arith.constant 0 : i32
    %c0_i32_1 = arith.constant 0 : i32
    return %c0_i32, %c0_i32_0 : i32, i32
  }
  func.func @transform_4(%arg0: i32) -> (i32, i32, i32) {
    %c0_i32 = arith.constant 0 : i32
    %c0_i32_0 = arith.constant 0 : i32
    %c0_i32_1 = arith.constant 0 : i32
    %c0_i32_2 = arith.constant 0 : i32
    return %c0_i32, %c0_i32_0, %c0_i32_1 : i32, i32, i32
  }
  func.func @transform_5(%arg0: i32) -> (i32, i32) {
    %c0_i32 = arith.constant 0 : i32
    %c0_i32_0 = arith.constant 0 : i32
    %c0_i32_1 = arith.constant 0 : i32
    return %c0_i32, %c0_i32_0 : i32, i32
  }
  func.func @transform_6(%arg0: i32) -> (i32, i32) {
    %c0_i32 = arith.constant 0 : i32
    %c0_i32_0 = arith.constant 0 : i32
    return %arg0, %c0_i32 : i32, i32
  }
}

</mosaic_0001>

<bundles_post_ra>
// kernel: tpu_custom_call.1
= control target key start
LH: loop header
LB: loop body
LE: loop exit
PB: predicated region body
PF: predicated region fallthrough
CT: control target
= control target key end

     0   :  { %11 = vsyncpa [#allocation3], 0  ;;  %s363_s0 = inlined_call_operand.vmem [shape: f32[8,12], index: 0, kind: input, shape index: {}]   ;;  %s364_s1 = inlined_call_operand.vmem [shape: f32[8,4], index: 1, kind: input, shape index: {}]   ;;  %s365_s2 = inlined_call_operand.hbm [shape: f32[12,128], index: 2, kind: input, shape index: {}]   ;;  %s366_s3 = inlined_call_operand.vmem [shape: f32[4,128], index: 3, kind: input, shape index: {}]   ;;  %s367_s4 = inlined_call_operand.hbm [shape: f32[2,128,128], index: 4, kind: input, shape index: {}]   ;;  %s368_s5 = inlined_call_operand.vmem [shape: f32[3,128], index: 5, kind: input, shape index: {}]   ;;  %s369_s6 = inlined_call_operand.hbm [shape: f32[8,128], index: 6, kind: output, shape index: {}]  }
   0x1   :  { %12 = vsyncpa [#allocation6], 0 }
   0x2   :  { %13 = vsyncpa [#allocation4], 0  ;;  %s22_s23 = sshll.u32 %s365_s2, 4  ;;  %s302_s24 = smov [#allocation2]   ;;  %s23_s23 = int_to_ptr.hbm [resolvable:$true] %s22_s23 }
   0x3   :  { %s24_s25 = sshll.u32 %s302_s24, 4  ;;  %s37_s28 = sshll.u32 %s367_s4, 4  ;;  %s25_s25 = int_to_ptr.vmem [resolvable:$true] %s24_s25  ;;  %s38_s28 = int_to_ptr.hbm [resolvable:$true] %s37_s28 }
   0x4   :  { %s303_s29 = smov 128   ;;  %s304_s30 = smov 8  }
   0x5   :  { %30 = dma.hbm_to_vmem [thread:$0]  %s23_s23, 256, %s25_s25, [#allocation3], %s303_s29, %s303_s29, %s304_s30  }
   0x6   :  { %s305_s7 = smov [#allocation5]  }
   0x7   :  { %s39_s8 = sshll.u32 %s305_s7, 4  ;;  %s40_s8 = int_to_ptr.vmem [resolvable:$true] %s39_s8 }
   0x8   :  { %45 = dma.hbm_to_vmem [thread:$0]  %s38_s28, 4096, %s40_s8, [#allocation6], %s303_s29, %s303_s29, %s304_s30  }
   0x9   :  { %296 = dma.done.wait [#allocation3], 256  }
   0xa   :  { %297 = vsyncadd [#allocation3], 4294967040 }
   0xb   :  { %298 = dma.done.wait [#allocation6], 4096  }
   0xc   :  { %299 = vsyncadd [#allocation6], 4294963200  ;;  %vm66_vm0 = vcmask 1043456   ;;  %vm62_vm1 = vcmask 31744   ;;  %v59_v0 = vld [vmem:[#allocation2 + $0x8] sm:$0xf] }
   0xd   :  { %v61_v1 = vld [vmem:[%s366_s3] sm:$0xf]  ;;  %217 = vmatpush.msk.msra.mxu1 %vm66_vm0, %v59_v0  ;;  %vm90_vm2 = vcmask 97280   ;;  %v135_v5 = vld [vmem:[#allocation5 + $0x78] sm:$0xff]  ;;  %v133_v7 = vld [vmem:[#allocation5 + $0x68] sm:$0xff]  ;;  %s306_s3 = smov [#allocation7]  }
   0xe   :  { %v58_v2 = vld [vmem:[#allocation2] sm:$0xff]  ;;  %215 = vmatpush.msk.msra.mxu0 %vm66_vm0, %v61_v1  ;;  %137 = vmatpush.msra.mxu2 %v135_v5  ;;  %v132_v8 = vld [vmem:[#allocation5 + $0x60] sm:$0xff]  ;;  %v131_v9 = vld [vmem:[#allocation5 + $0x58] sm:$0xff]  ;;  %s204_s15 = sshll.u32 %s369_s6, 4  ;;  %s205_s15 = int_to_ptr.hbm [resolvable:$true] %s204_s15 }
   0xf   :  { %v60_v3 = vld [vmem:[%s364_s1] sm:$0xff]  ;;  %112 = vmatpush.msra.mxu1 %v58_v2  ;;  %v129_v11 = vld [vmem:[#allocation5 + $0x48] sm:$0xff]  ;;  %v128_v12 = vld [vmem:[#allocation5 + $0x40] sm:$0xff] }
  0x10   :  { %v57_v4 = vld [vmem:[%s363_s0] sm:$0xff]  ;;  %216 = vmatmul.msk.f32.vlgmr.msra.gmra.mxu0 %vm62_vm1, %v60_v3  ;;  %v127_v13 = vld [vmem:[#allocation5 + $0x38] sm:$0xff]  ;;  %v125_v15 = vld [vmem:[#allocation5 + $0x28] sm:$0xff] }
  0x11   :  { %v134_v6 = vld [vmem:[#allocation5 + $0x70] sm:$0xff]  ;;  %218 = vmatmul.msk.f32.vlgmr.msra.gmra.mxu1 %vm90_vm2, %v57_v4  ;;  %v124_v16 = vld [vmem:[#allocation5 + $0x20] sm:$0xff]  ;;  %v123_v17 = vld [vmem:[#allocation5 + $0x18] sm:$0xff] }
  0x12   :  { %138 = vmatpush.msra.mxu2 %v134_v6  ;;  %v130_v10 = vld [vmem:[#allocation5 + $0x50] sm:$0xff]  ;;  %v121_v19 = vld [vmem:[#allocation5 + $0x8] sm:$0xff]  ;;  %v120_v20 = vld [vmem:[#allocation5] sm:$0xff] }
  0x13   :  { %v126_v14 = vld [vmem:[#allocation5 + $0x30] sm:$0xff]  ;;  %v174_v21 = vld [vmem:[#allocation5 + $0xf8] sm:$0xff]  ;;  %v172_v23 = vld [vmem:[#allocation5 + $0xe8] sm:$0xff] }
  0x14   :  { %139 = vmatpush.msra.mxu2 %v133_v7  ;;  %v122_v18 = vld [vmem:[#allocation5 + $0x10] sm:$0xff]  ;;  %176 = vmatpush.msra.mxu3 %v174_v21  ;;  %v171_v24 = vld [vmem:[#allocation5 + $0xe0] sm:$0xff]  ;;  %v170_v25 = vld [vmem:[#allocation5 + $0xd8] sm:$0xff] }
  0x15   :  { %v173_v22 = vld [vmem:[#allocation5 + $0xf0] sm:$0xff]  ;;  %v168_v27 = vld [vmem:[#allocation5 + $0xc8] sm:$0xff]  ;;  %v167_v28 = vld [vmem:[#allocation5 + $0xc0] sm:$0xff] }
  0x16   :  { %140 = vmatpush.msra.mxu2 %v132_v8  ;;  %177 = vmatpush.msra.mxu3 %v173_v22  ;;  %v169_v26 = vld [vmem:[#allocation5 + $0xd0] sm:$0xff]  ;;  %v166_v29 = vld [vmem:[#allocation5 + $0xb8] sm:$0xff]  ;;  %v164_v31 = vld [vmem:[#allocation5 + $0xa8] sm:$0xff] }
  0x17   :  { %v165_v30 = vld [vmem:[#allocation5 + $0xb0] sm:$0xff]  ;;  %v163_v32 = vld [vmem:[#allocation5 + $0xa0] sm:$0xff]  ;;  %v162_v34 = vld [vmem:[#allocation5 + $0x98] sm:$0xff] }
  0x18   :  { %141 = vmatpush.msra.mxu2 %v131_v9  ;;  %178 = vmatpush.msra.mxu3 %v172_v23  ;;  %v56_v33 = vld [vmem:[%s368_s5] sm:$0x7]  ;;  %v160_v42 = vld [vmem:[#allocation5 + $0x88] sm:$0xff]  ;;  %v159_v43 = vld [vmem:[#allocation5 + $0x80] sm:$0xff]  ;;  %s202_s5 = sshll.u32 %s306_s3, 4  ;;  %s203_s5 = int_to_ptr.vmem [resolvable:$true] %s202_s5 }
  0x19   :  { %v117_v36 = vperm.slane %v56_v33, 0  ;;  %v161_v41 = vld [vmem:[#allocation5 + $0x90] sm:$0xff]  ;;  %v136_v44 = vperm.slane %v56_v33, 1  ;;  %v175_v48 = vperm.slane %v56_v33, 2 }
  0x1a   :  { %142 = vmatpush.msra.mxu2 %v130_v10  ;;  %179 = vmatpush.msra.mxu3 %v171_v24 }
  0x1c   :  { %143 = vmatpush.msra.mxu2 %v129_v11  ;;  %180 = vmatpush.msra.mxu3 %v170_v25 }
  0x1e   :  { %144 = vmatpush.msra.mxu2 %v128_v12  ;;  %181 = vmatpush.msra.mxu3 %v169_v26 }
  0x20   :  { %145 = vmatpush.msra.mxu2 %v127_v13  ;;  %182 = vmatpush.msra.mxu3 %v168_v27 }
  0x22   :  { %146 = vmatpush.msra.mxu2 %v126_v14  ;;  %183 = vmatpush.msra.mxu3 %v167_v28 }
  0x24   :  { %147 = vmatpush.msra.mxu2 %v125_v15  ;;  %184 = vmatpush.msra.mxu3 %v166_v29 }
  0x26   :  { %148 = vmatpush.msra.mxu2 %v124_v16  ;;  %185 = vmatpush.msra.mxu3 %v165_v30 }
  0x28   :  { %149 = vmatpush.msra.mxu2 %v123_v17  ;;  %186 = vmatpush.msra.mxu3 %v164_v31 }
  0x2a   :  { %150 = vmatpush.msra.mxu2 %v122_v18  ;;  %187 = vmatpush.msra.mxu3 %v163_v32 }
  0x2c   :  { %151 = vmatpush.msra.mxu2 %v121_v19  ;;  %188 = vmatpush.msra.mxu3 %v162_v34 }
  0x2e   :  { %152 = vmatpush.msra.mxu2 %v120_v20  ;;  %189 = vmatpush.msra.mxu3 %v161_v41 }
  0x30   :  { %190 = vmatpush.msra.mxu3 %v160_v42 }
  0x32   :  { %191 = vmatpush.msra.mxu3 %v159_v43 }
  0x8d   :  { %v87_v35 = vpop.f32.mrf.mxu0 }
  0x8e   :  { %v114_v37 = vpop.f32.mrf.mxu1 }
  0x8f   :  { %v115_v38 = vadd.f32 %v114_v37, %v87_v35 }
  0x91   :  { %v118_v39 = vadd.f32 %v117_v36, %v115_v38 }
  0x93   :  { %v119_v40 = vmax.f32 %v118_v39, 0.0 }
  0x95   :  { %153 = vmatmul.f32.vlgmr.msra.gmra.mxu2 %v119_v40 }
 0x118   :  { %v154_v45 = vpop.f32.mrf.mxu2 }
 0x119   :  { %v155_v46 = vadd.f32 %v154_v45, %v136_v44 }
 0x11b   :  { %v157_v47 = vmax.f32 %v155_v46, 0.0 }
 0x11d   :  { %192 = vmatmul.f32.vlgmr.msra.gmra.mxu3 %v157_v47 }
 0x1a0   :  { %v193_v49 = vpop.f32.mrf.mxu3 }
 0x1a1   :  { %v194_v50 = vadd.f32 %v193_v49, %v175_v48 }
 0x1a3   :  { %196 = vst [vmem:[#allocation7] sm:$0xff] %v194_v50 }
 0x1a4   :  { %207 = dma.vmem_to_hbm [thread:$0]  %s203_s5, 128, %s205_s15, [#allocation4]  }
 0x1a5   :  { %300 = dma.done.wait [#allocation4], 128  }
 0x1a6   :  { %301 = vsyncadd [#allocation4], 4294967168 }
 0x1a7   :  { %212 = vsyncpa [#allocation3], 1 }
 0x1a8   :  { %213 = vsyncpa [#allocation6], 1 }
 0x1a9   :  { %214 = vsyncpa [#allocation4], 1 }

</bundles_post_ra>
